<compile_context>
chip_gen: v7x
topology: tpu7x:2x2x1
jax: 0.10.0
libtpu: 0.0.40
codegen_flags: <defaults>
</compile_context>

<pallas_src>
import functools
import math

import numpy as np
import jax
import jax.numpy as jnp
from jax.experimental import pallas as pl
from jax.experimental.pallas import tpu as pltpu

# ----------------------------------------------------------------------------
# Synthetic (small) m2l hyper-parameters (pad-size formula + synthetic encoder).
# ----------------------------------------------------------------------------
M2L_HPARAMS = {
    "hop": 48,
    "freq_downsample_list": [0, 1, 0, 1],  # count(0) == 2 -> downscaling_factor 4
}
ORIG_FREQ = 16000
NEW_FREQ = 44100
HOP = M2L_HPARAMS["hop"]
WIN = 2 * HOP                 # 96 (synthetic representation window)
D_HIDDEN = 128                # synthetic encoder hidden width
D_FEAT = 64                   # synthetic "extract_features" output dim
D_BOTTLENECK = 32             # synthetic 1x1-conv bottleneck dim
D_OUT_PAD = 128               # lane-dense encoder output width (sliced in wrapper)
LEAKY_SLOPE = 0.01            # matches torch.nn.LeakyReLU default
N_POLY = 512                  # 441 polyphase outputs padded to a multiple of 128 lanes
MAX_ROW_TILE = 512            # row tile for both kernels (adaptive for tiny inputs)


def _round_up(x, m):
    return (x + m - 1) // m * m


@functools.lru_cache(maxsize=None)
def _vmem_limit():
    # Generation-dependent VMEM budget (v5e/v6e: 128 MiB physical, v7x: 64 MiB).
    try:
        cap = int(pltpu.get_tpu_info().vmem_capacity_bytes)
        return int(min(cap // 2, 64 * 1024 * 1024))
    except Exception:
        return 32 * 1024 * 1024


# ----------------------------------------------------------------------------
# torchaudio-equivalent windowed-sinc polyphase kernel (parameter setup, once).
# ----------------------------------------------------------------------------
def build_polyphase_kernel(orig_freq=ORIG_FREQ, new_freq=NEW_FREQ,
                           lowpass_filter_width=6, rolloff=0.99):
    """Returns kern (new, klen) float64 and (orig, new, width).  Same math as
    torchaudio.transforms.Resample defaults (sinc_interp_hann)."""
    g = math.gcd(orig_freq, new_freq)
    orig, new = orig_freq // g, new_freq // g           # 160, 441
    base_freq = min(orig, new) * rolloff
    width = int(math.ceil(lowpass_filter_width * orig / base_freq))
    idx = np.arange(-width, width + orig, dtype=np.float64)[None, :] / orig
    phase = np.arange(0, -new, -1, dtype=np.float64)[:, None] / new
    t = (phase + idx) * base_freq
    t = np.clip(t, -lowpass_filter_width, lowpass_filter_width)
    window = np.cos(t * np.pi / lowpass_filter_width / 2.0) ** 2   # hann
    t = t * np.pi
    safe_t = np.where(t == 0.0, 1.0, t)
    kern = np.where(t == 0.0, 1.0, np.sin(t) / safe_t) * window
    kern *= base_freq / orig
    return kern, orig, new, width


_KERN_F64, POLY_ORIG, POLY_NEW, POLY_WIDTH = build_polyphase_kernel()
POLY_KLEN = _KERN_F64.shape[1]          # 2*width + orig = 174 taps per output phase


def calculate_pad_size(input_length=32767):
    # Matches M2LLayer.calculate_pad_size; the module caches this at __init__ with
    # input_length=32767, so we do the same.
    resampled_length = int(np.ceil(input_length * NEW_FREQ / ORIG_FREQ))
    hop = M2L_HPARAMS["hop"]
    downscaling_factor = 2 ** M2L_HPARAMS["freq_downsample_list"].count(0)
    multiple = hop * downscaling_factor
    target_length = resampled_length // multiple * multiple + 3 * hop
    return max(0, target_length - resampled_length)


PAD_SIZE = calculate_pad_size(32767)


# ----------------------------------------------------------------------------
# Pallas kernel 1: polyphase resample matmul  Y = X_slab @ P
#   X_slab: (rows, klen)  bf16 im2col'd input windows (stride 160, width 174)
#   P:      (klen, 512)   bf16 polyphase kernel (441 real cols + zero pad), VMEM-resident
# ----------------------------------------------------------------------------
def _poly_resample_kernel(x_ref, p_ref, o_ref):
    o_ref[...] = jnp.dot(x_ref[...], p_ref[...],
                         preferred_element_type=jnp.float32)


def pallas_poly_resample(x_slab_p, kern_p, tm):
    rows_p, klen = x_slab_p.shape
    _, n_poly = kern_p.shape
    assert rows_p % tm == 0
    return pl.pallas_call(
        _poly_resample_kernel,
        out_shape=jax.ShapeDtypeStruct((rows_p, n_poly), jnp.float32),
        grid_spec=pltpu.PrefetchScalarGridSpec(
            num_scalar_prefetch=0,
            grid=(rows_p // tm,),
            in_specs=[
                pl.BlockSpec((tm, klen), lambda i: (i, 0)),     # stream row tiles
                pl.BlockSpec((klen, n_poly), lambda i: (0, 0)),  # resident (~180 KB bf16)
            ],
            out_specs=pl.BlockSpec((tm, n_poly), lambda i: (i, 0)),
        ),
        compiler_params=pltpu.CompilerParams(
            dimension_semantics=("parallel",),
            vmem_limit_bytes=_vmem_limit()),
    )(x_slab_p, kern_p)


# ----------------------------------------------------------------------------
# Pallas kernel 2: fused representation + encoder (+ folded bottleneck)
#   h   = leaky(frames @ W_eff + b1)        W_eff = rep_W @ w1   (folded offline)
#   out = h @ W2_fold + b2_fold             W2_fold = w2 [@ w_bn], zero-padded to 128 cols
# All weights VMEM-resident; grid only over M = B * n_frames; lane-dense 128-wide output.
# ----------------------------------------------------------------------------
def _encoder_kernel(x_ref, w1_ref, b1_ref, w2_ref, b2_ref, o_ref, *, negative_slope):
    h = jnp.dot(x_ref[...], w1_ref[...],
                preferred_element_type=jnp.float32) + b1_ref[...]
    h = jnp.where(h > 0, h, negative_slope * h).astype(w2_ref.dtype)
    o_ref[...] = (jnp.dot(h, w2_ref[...], preferred_element_type=jnp.float32)
                  + b2_ref[...]).astype(o_ref.dtype)


def pallas_encoder(frames_p, w_eff, b1, w2, b2, tm):
    mp, win = frames_p.shape
    d_h = w_eff.shape[1]
    d_o = w2.shape[1]
    assert mp % tm == 0
    kernel = functools.partial(_encoder_kernel, negative_slope=LEAKY_SLOPE)

    def resident(shape):
        return pl.BlockSpec(shape, lambda i: (0, 0))

    return pl.pallas_call(
        kernel,
        out_shape=jax.ShapeDtypeStruct((mp, d_o), jnp.float32),
        grid_spec=pltpu.PrefetchScalarGridSpec(
            num_scalar_prefetch=0,
            grid=(mp // tm,),
            in_specs=[
                pl.BlockSpec((tm, win), lambda i: (i, 0)),
                resident((win, d_h)),
                resident((1, d_h)),
                resident((d_h, d_o)),
                resident((1, d_o)),
            ],
            out_specs=pl.BlockSpec((tm, d_o), lambda i: (i, 0)),
        ),
        compiler_params=pltpu.CompilerParams(
            dimension_semantics=("parallel",),
            vmem_limit_bytes=_vmem_limit()),
    )(frames_p, w_eff, b1, w2, b2)


# ----------------------------------------------------------------------------
# Synthetic to_representation_encoder: windowed real-DFT projection matrix.
# ----------------------------------------------------------------------------
def build_representation_matrix(hop):
    win = 2 * hop
    F = hop
    n = np.arange(win, dtype=np.float64)
    f = np.arange(F, dtype=np.float64)
    hann = 0.5 - 0.5 * np.cos(2.0 * np.pi * n / win)
    ang = 2.0 * np.pi * np.outer(n, f) / win
    cosm = np.cos(ang) * hann[:, None]
    sinm = -np.sin(ang) * hann[:, None]
    W = np.concatenate([cosm, sinm], axis=1) / win                 # (win, 2F) = (96, 96)
    return W.astype(np.float32)


def init_encoder_params(key, in_dim):
    k1, k2, k3 = jax.random.split(key, 3)
    w1 = jax.random.normal(k1, (in_dim, D_HIDDEN), jnp.float32) / np.sqrt(in_dim)
    b1 = jnp.zeros((D_HIDDEN,), jnp.float32)
    w2 = jax.random.normal(k2, (D_HIDDEN, D_FEAT), jnp.float32) / np.sqrt(D_HIDDEN)
    b2 = jnp.zeros((D_FEAT,), jnp.float32)
    w_bn = jax.random.normal(k3, (D_FEAT, D_BOTTLENECK), jnp.float32) / np.sqrt(D_FEAT)
    b_bn = jnp.zeros((D_BOTTLENECK,), jnp.float32)
    return dict(w1=w1, b1=b1, w2=w2, b2=b2, w_bn=w_bn, b_bn=b_bn)


# ----------------------------------------------------------------------------
# One-time constant preparation (all algebraic folding / padding / casting done ONCE).
# ----------------------------------------------------------------------------
def prepare_constants(key):
    # Polyphase kernel matrix P: (klen, 441) zero-padded to (klen, 512) for lane-dense N.
    P = np.zeros((POLY_KLEN, N_POLY), np.float32)
    P[:, :POLY_NEW] = _KERN_F64.T.astype(np.float32)

    rep_W = build_representation_matrix(HOP)                       # (96, 96)
    params = init_encoder_params(key, WIN)

    # Fold representation projection into the first encoder layer (no nonlinearity
    # between them): W_eff = rep_W @ w1.
    W_eff = jnp.asarray(rep_W) @ params["w1"]                      # (96, 128)

    # Fold the 1x1-conv bottleneck into the second dense (no nonlinearity between them):
    # NOTE: valid only because the synthetic encoder has no activation at that boundary.
    W2_bn = params["w2"] @ params["w_bn"]                          # (128, 32)
    b2_bn = params["b2"] @ params["w_bn"] + params["b_bn"]         # (32,)

    def pad_cols(w, n=D_OUT_PAD):
        return jnp.pad(w, ((0, 0), (0, n - w.shape[-1])))

    consts = dict(
        P=jnp.asarray(P, jnp.bfloat16),
        W_eff=W_eff.astype(jnp.bfloat16),
        b1=params["b1"].reshape(1, -1),                            # (1,128) f32
        W2=pad_cols(params["w2"]).astype(jnp.bfloat16),            # (128,128) bf16
        b2=pad_cols(params["b2"].reshape(1, -1)),                  # (1,128)  f32
        W2_bn=pad_cols(W2_bn).astype(jnp.bfloat16),                # (128,128) bf16
        b2_bn=pad_cols(b2_bn.reshape(1, -1)),                      # (1,128)  f32
    )
    # f32, un-padded copies for the pure-JAX reference check.
    ref_params = dict(
        W_eff=W_eff, b1=params["b1"], W2=params["w2"], b2=params["b2"],
        W2_bn=W2_bn, b2_bn=b2_bn,
    )
    return consts, ref_params


# ----------------------------------------------------------------------------
# M2LLayer forward (extract_features=True; apply_1x1conv_to_output optional).
# ----------------------------------------------------------------------------
@functools.partial(jax.jit, static_argnames=("apply_1x1conv_to_output",))
def m2l_layer_forward(x, consts, *, apply_1x1conv_to_output=False):
    B, C, T_in = x.shape
    orig, new, width, klen = POLY_ORIG, POLY_NEW, POLY_WIDTH, POLY_KLEN
    t_out = (T_in * new + orig - 1) // orig            # ceil(T_in * 44100 / 16000)
    m_out = T_in // orig + 1                           # number of polyphase frames

    # 1) torchaudio-equivalent sinc resample, polyphase formulation (Pallas matmul).
    M = B * C
    x_flat = x.reshape(M, T_in).astype(jnp.float32)
    pad_right = (m_out + 1) * orig - width - T_in
    x_pad = jnp.pad(x_flat, ((0, 0), (width, pad_right)))          # len (m_out+1)*orig
    chunks = x_pad.reshape(M, m_out + 1, orig)
    # window m = x_pad[m*orig : m*orig + klen]  (klen - orig = 2*width overlap)
    x_slab = jnp.concatenate(
        [chunks[:, :m_out, :], chunks[:, 1:, :klen - orig]], axis=-1)   # (M, m_out, klen)
    rows = M * m_out
    x_slab = x_slab.reshape(rows, klen).astype(jnp.bfloat16)
    tm = min(MAX_ROW_TILE, _round_up(rows, 16))
    rows_p = _round_up(rows, tm)
    x_slab_p = jnp.pad(x_slab, ((0, rows_p - rows), (0, 0)))
    y = pallas_poly_resample(x_slab_p, consts["P"], tm)            # (rows_p, 512) f32
    resampled = (y[:rows]
                 .reshape(M, m_out, N_POLY)[:, :, :new]
                 .reshape(M, m_out * new)[:, :t_out])              # (M, t_out)

    # 2) apply_padding (pad_size cached from 32767 like the module) + channel 0.
    mono = jnp.pad(resampled.reshape(B, C, t_out)[:, 0, :], ((0, 0), (0, PAD_SIZE)))
    T_pad = t_out + PAD_SIZE

    # 3+4+5) to_representation_encoder + encoder(extract_features=True) + optional
    #        bottleneck: DFT projection folded into W_eff, bottleneck folded into W2;
    #        the whole thing is one fused Pallas kernel over (B*n_frames, 96) frames.
    n_frames = (T_pad - WIN) // HOP + 1
    a = mono[:, :(n_frames + 1) * HOP].reshape(B, n_frames + 1, HOP)
    frames = jnp.concatenate([a[:, :n_frames, :], a[:, 1:, :]], axis=-1)  # (B, nf, 96)
    Me = B * n_frames
    frames = frames.reshape(Me, WIN).astype(jnp.bfloat16)
    tme = min(MAX_ROW_TILE, _round_up(Me, 16))
    Mep = _round_up(Me, tme)
    frames_p = jnp.pad(frames, ((0, Mep - Me), (0, 0)))

    if apply_1x1conv_to_output:
        w2, b2, d_out = consts["W2_bn"], consts["b2_bn"], D_BOTTLENECK
    else:
        w2, b2, d_out = consts["W2"], consts["b2"], D_FEAT
    feat = pallas_encoder(frames_p, consts["W_eff"], consts["b1"], w2, b2, tme)

    # 6) rearrange 'b d t -> b t d' — the two transposes cancel; slice lane padding.
    return feat[:Me, :d_out].reshape(B, n_frames, d_out)


# ----------------------------------------------------------------------------
# Pure-JAX f32 reference (dense resample matrix) for validation.
# ----------------------------------------------------------------------------
def build_dense_resample_matrix(t_in):
    t_out = (t_in * POLY_NEW + POLY_ORIG - 1) // POLY_ORIG
    j = np.arange(t_out)
    m, p = j // POLY_NEW, j % POLY_NEW
    in_idx = m[:, None] * POLY_ORIG - POLY_WIDTH + np.arange(POLY_KLEN)[None, :]
    vals = _KERN_F64[p]
    valid = (in_idx >= 0) & (in_idx < t_in)
    R = np.zeros((t_in, t_out), np.float32)
    rows = in_idx[valid]
    cols = np.broadcast_to(j[:, None], in_idx.shape)[valid]
    R[rows, cols] = vals[valid].astype(np.float32)
    return R, t_out


def reference_forward(x, refp, apply_1x1conv_to_output):
    B, C, T_in = x.shape
    R, t_out = build_dense_resample_matrix(T_in)
    resampled = jnp.asarray(x[:, 0, :], jnp.float32) @ jnp.asarray(R)   # (B, t_out)
    mono = jnp.pad(resampled, ((0, 0), (0, PAD_SIZE)))
    T_pad = t_out + PAD_SIZE
    n_frames = (T_pad - WIN) // HOP + 1
    idx = np.arange(n_frames)[:, None] * HOP + np.arange(WIN)[None, :]
    frames = mono[:, idx]                                               # (B, nf, 96)
    h = frames @ refp["W_eff"] + refp["b1"]
    h = jnp.where(h > 0, h, LEAKY_SLOPE * h)
    if apply_1x1conv_to_output:
        return h @ refp["W2_bn"] + refp["b2_bn"]
    return h @ refp["W2"] + refp["b2"]


if __name__ == "__main__":
    key = jax.random.PRNGKey(0)
    kx, kp = jax.random.split(key)

    B, C, T_in = 2, 1, 1024
    x = jax.random.normal(kx, (B, C, T_in), jnp.float32)

    consts, refp = prepare_constants(kp)

    # Default path (extract_features=True, apply_1x1conv_to_output=False).
    out = m2l_layer_forward(x, consts, apply_1x1conv_to_output=False)
    out = jax.block_until_ready(out)
    assert out.ndim == 3 and out.shape[0] == B and out.shape[2] == D_FEAT
    assert bool(jnp.all(jnp.isfinite(out)))
    ref = reference_forward(x, refp, False)
    err = float(jnp.max(jnp.abs(out - ref)))
    scale = float(jnp.max(jnp.abs(ref)))
    assert err <= 0.05 * scale + 1e-4, (err, scale)

    # Bottleneck path (apply_1x1conv_to_output=True), folded into the same kernel.
    out_bn = m2l_layer_forward(x, consts, apply_1x1conv_to_output=True)
    out_bn = jax.block_until_ready(out_bn)
    assert out_bn.shape == (B, out.shape[1], D_BOTTLENECK)
    assert bool(jnp.all(jnp.isfinite(out_bn)))
    ref_bn = reference_forward(x, refp, True)
    err_bn = float(jnp.max(jnp.abs(out_bn - ref_bn)))
    scale_bn = float(jnp.max(jnp.abs(ref_bn)))
    assert err_bn <= 0.05 * scale_bn + 1e-4, (err_bn, scale_bn)

    print("KERNEL_OK")
</pallas_src>

<mosaic_0001>
module attributes {stable_mosaic.version = 11 : i64} {
  func.func @_poly_resample_kernel(%arg0: i32, %arg1: memref<16x174xbf16, #tpu.memory_space<vmem>>, %arg2: memref<174x512xbf16, #tpu.memory_space<vmem>>, %arg3: memref<16x512xf32, #tpu.memory_space<vmem>>) attributes {dimension_semantics = [#tpu.dimension_semantics<parallel>], iteration_bounds = array<i64: 1>, scalar_prefetch = 0 : i64, scratch_operands = 0 : i64, tpu.core_type = #tpu.core_type<tc>, window_params = [{transform_indices = @transform_0, window_bounds = array<i64: 16, 174>}, {pipeline_mode = #tpu.pipeline_mode<synchronous>, transform_indices = @transform_1, window_bounds = array<i64: 174, 512>}, {transform_indices = @transform_2, window_bounds = array<i64: 16, 512>}]} {
    %c0 = arith.constant 0 : index
    %c0_0 = arith.constant 0 : index
    %0 = vector.load %arg1[%c0, %c0_0] : memref<16x174xbf16, #tpu.memory_space<vmem>>, vector<16x174xbf16>
    %c0_1 = arith.constant 0 : index
    %c0_2 = arith.constant 0 : index
    %1 = vector.load %arg2[%c0_1, %c0_2] : memref<174x512xbf16, #tpu.memory_space<vmem>>, vector<174x512xbf16>
    %cst = arith.constant dense<0.000000e+00> : vector<16x512xf32>
    %2 = tpu.matmul %0, %1, %cst {dimension_numbers = #tpu.dot_dimension_numbers<[1], [0], [0], [1], [0, 0, 1, 1], [], []>} : vector<16x174xbf16>, vector<174x512xbf16>, vector<16x512xf32> -> vector<16x512xf32>
    %c0_3 = arith.constant 0 : index
    %c0_4 = arith.constant 0 : index
    %3 = vector.load %arg3[%c0_3, %c0_4] : memref<16x512xf32, #tpu.memory_space<vmem>>, vector<16x512xf32>
    tpu.vector_store %arg3[%c0_3, %c0_4], %2 {strides = array<i32>} : memref<16x512xf32, #tpu.memory_space<vmem>>, vector<16x512xf32>,
    return
  }
  func.func @transform_0(%arg0: i32) -> (i32, i32) {
    %c0_i32 = arith.constant 0 : i32
    %c0_i32_0 = arith.constant 0 : i32
    return %arg0, %c0_i32 : i32, i32
  }
  func.func @transform_1(%arg0: i32) -> (i32, i32) {
    %c0_i32 = arith.constant 0 : i32
    %c0_i32_0 = arith.constant 0 : i32
    %c0_i32_1 = arith.constant 0 : i32
    return %c0_i32, %c0_i32_0 : i32, i32
  }
  func.func @transform_2(%arg0: i32) -> (i32, i32) {
    %c0_i32 = arith.constant 0 : i32
    %c0_i32_0 = arith.constant 0 : i32
    return %arg0, %c0_i32 : i32, i32
  }
}

module attributes {stable_mosaic.version = 11 : i64} {
  func.func @_encoder_kernel(%arg0: i32, %arg1: memref<128x96xbf16, #tpu.memory_space<vmem>>, %arg2: memref<96x128xbf16, #tpu.memory_space<vmem>>, %arg3: memref<1x128xf32, #tpu.memory_space<vmem>>, %arg4: memref<128x128xbf16, #tpu.memory_space<vmem>>, %arg5: memref<1x128xf32, #tpu.memory_space<vmem>>, %arg6: memref<128x128xf32, #tpu.memory_space<vmem>>) attributes {dimension_semantics = [#tpu.dimension_semantics<parallel>], iteration_bounds = array<i64: 1>, scalar_prefetch = 0 : i64, scratch_operands = 0 : i64, tpu.core_type = #tpu.core_type<tc>, window_params = [{transform_indices = @transform_0, window_bounds = array<i64: 128, 96>}, {pipeline_mode = #tpu.pipeline_mode<synchronous>, transform_indices = @transform_1, window_bounds = array<i64: 96, 128>}, {pipeline_mode = #tpu.pipeline_mode<synchronous>, transform_indices = @transform_2, window_bounds = array<i64: 1, 128>}, {pipeline_mode = #tpu.pipeline_mode<synchronous>, transform_indices = @transform_3, window_bounds = array<i64: 128, 128>}, {pipeline_mode = #tpu.pipeline_mode<synchronous>, transform_indices = @transform_4, window_bounds = array<i64: 1, 128>}, {transform_indices = @transform_5, window_bounds = array<i64: 128, 128>}]} {
    %c0 = arith.constant 0 : index
    %c0_0 = arith.constant 0 : index
    %0 = vector.load %arg1[%c0, %c0_0] : memref<128x96xbf16, #tpu.memory_space<vmem>>, vector<128x96xbf16>
    %c0_1 = arith.constant 0 : index
    %c0_2 = arith.constant 0 : index
    %1 = vector.load %arg2[%c0_1, %c0_2] : memref<96x128xbf16, #tpu.memory_space<vmem>>, vector<96x128xbf16>
    %cst = arith.constant dense<0.000000e+00> : vector<128x128xf32>
    %2 = tpu.matmul %0, %1, %cst {dimension_numbers = #tpu.dot_dimension_numbers<[1], [0], [0], [1], [0, 0, 1, 1], [], []>} : vector<128x96xbf16>, vector<96x128xbf16>, vector<128x128xf32> -> vector<128x128xf32>
    %c0_3 = arith.constant 0 : index
    %c0_4 = arith.constant 0 : index
    %3 = vector.load %arg3[%c0_3, %c0_4] : memref<1x128xf32, #tpu.memory_space<vmem>>, vector<1x128xf32>
    %4 = vector.broadcast %3 : vector<1x128xf32> to vector<128x128xf32>
    %5 = arith.addf %2, %4 : vector<128x128xf32>
    %cst_5 = arith.constant 0.000000e+00 : f32
    %6 = vector.broadcast %cst_5 : f32 to vector<128x128xf32>
    %7 = arith.cmpf ogt, %5, %6 : vector<128x128xf32>
    %cst_6 = arith.constant 0.00999999977 : f32
    %8 = vector.broadcast %cst_6 : f32 to vector<128x128xf32>
    %9 = arith.mulf %8, %5 : vector<128x128xf32>
    %10 = arith.select %7, %5, %9 : vector<128x128xi1>, vector<128x128xf32>
    %11 = arith.truncf %10 : vector<128x128xf32> to vector<128x128xbf16>
    %c0_7 = arith.constant 0 : index
    %c0_8 = arith.constant 0 : index
    %12 = vector.load %arg4[%c0_7, %c0_8] : memref<128x128xbf16, #tpu.memory_space<vmem>>, vector<128x128xbf16>
    %cst_9 = arith.constant dense<0.000000e+00> : vector<128x128xf32>
    %13 = tpu.matmul %11, %12, %cst_9 {dimension_numbers = #tpu.dot_dimension_numbers<[1], [0], [0], [1], [0, 0, 1, 1], [], []>} : vector<128x128xbf16>, vector<128x128xbf16>, vector<128x128xf32> -> vector<128x128xf32>
    %c0_10 = arith.constant 0 : index
    %c0_11 = arith.constant 0 : index
    %14 = vector.load %arg5[%c0_10, %c0_11] : memref<1x128xf32, #tpu.memory_space<vmem>>, vector<1x128xf32>
    %15 = vector.broadcast %14 : vector<1x128xf32> to vector<128x128xf32>
    %16 = arith.addf %13, %15 : vector<128x128xf32>
    %c0_12 = arith.constant 0 : index
    %c0_13 = arith.constant 0 : index
    %17 = vector.load %arg6[%c0_12, %c0_13] : memref<128x128xf32, #tpu.memory_space<vmem>>, vector<128x128xf32>
    tpu.vector_store %arg6[%c0_12, %c0_13], %16 {strides = array<i32>} : memref<128x128xf32, #tpu.memory_space<vmem>>, vector<128x128xf32>,
    return
  }
  func.func @transform_0(%arg0: i32) -> (i32, i32) {
    %c0_i32 = arith.constant 0 : i32
    %c0_i32_0 = arith.constant 0 : i32
    return %arg0, %c0_i32 : i32, i32
  }
  func.func @transform_1(%arg0: i32) -> (i32, i32) {
    %c0_i32 = arith.constant 0 : i32
    %c0_i32_0 = arith.constant 0 : i32
    %c0_i32_1 = arith.constant 0 : i32
    return %c0_i32, %c0_i32_0 : i32, i32
  }
  func.func @transform_2(%arg0: i32) -> (i32, i32) {
    %c0_i32 = arith.constant 0 : i32
    %c0_i32_0 = arith.constant 0 : i32
    %c0_i32_1 = arith.constant 0 : i32
    return %c0_i32, %c0_i32_0 : i32, i32
  }
  func.func @transform_3(%arg0: i32) -> (i32, i32) {
    %c0_i32 = arith.constant 0 : i32
    %c0_i32_0 = arith.constant 0 : i32
    %c0_i32_1 = arith.constant 0 : i32
    return %c0_i32, %c0_i32_0 : i32, i32
  }
  func.func @transform_4(%arg0: i32) -> (i32, i32) {
    %c0_i32 = arith.constant 0 : i32
    %c0_i32_0 = arith.constant 0 : i32
    %c0_i32_1 = arith.constant 0 : i32
    return %c0_i32, %c0_i32_0 : i32, i32
  }
  func.func @transform_5(%arg0: i32) -> (i32, i32) {
    %c0_i32 = arith.constant 0 : i32
    %c0_i32_0 = arith.constant 0 : i32
    return %arg0, %c0_i32 : i32, i32
  }
}

</mosaic_0001>

<bundles_post_ra>
// kernel: m2l_layer_forward.2
= control target key start
LH: loop header
LB: loop body
LE: loop exit
PB: predicated region body
PF: predicated region fallthrough
CT: control target
= control target key end

     0   :  { %7 = vsyncpa [#allocation3], 0  ;;  %s559_s9 = smov [#allocation2]   ;;  %s619_s0 = inlined_call_operand.vmem [shape: bf16[16,174], index: 0, kind: input, shape index: {}]   ;;  %s620_s1 = inlined_call_operand.hbm [shape: bf16[174,512], index: 1, kind: input, shape index: {}]   ;;  %s621_s2 = inlined_call_operand.vmem [shape: f32[16,512], index: 2, kind: output, shape index: {}]  }
   0x1   :  { %s15_s10 = sshll.u32 %s559_s9, 4  ;;  %s535_s13 = scalar_lea.hbm %s620_s1, 5632  ;;  %s16_s10 = int_to_ptr.vmem [resolvable:$true] %s15_s10 }
   0x2   :  { %p536_p0 = scmp.ne.s32.totalorder %s620_s1, %s535_s13  ;;  %p539_p1 = scmp.lt.u32.totalorder %s535_s13, %s620_s1 }
   0x4   :  { %p541_p2 = pnand %p539_p1, %p536_p0 }
   0x6   :  { %544 = shalt.err (!%p541_p2)
}
   0x7   :  { %s545_s18 = scalar_lea.vmem %s16_s10, 5632  ;;  %p550_p4 = scmp.lt.s32.totalorder %s16_s10, %s16_s10 }
   0x8   :  { %p546_p3 = scmp.ne.s32.totalorder %s16_s10, %s545_s18  ;;  %p551_p5 = scmp.lt.s32.totalorder %s545_s18, %s545_s18 }
   0xa   :  { %p552_p6 = por %p551_p5, %p550_p4 }
   0xc   :  { %p553_p7 = pnand %p552_p6, %p546_p3 }
   0xe   :  { %556 = shalt.err (!%p553_p7)
}
   0xf   :  { %s560_s19 = smov 256   ;;  %s561_s20 = smov 16  }
  0x10   :  { %21 = dma.hbm_to_vmem [thread:$0]  %s620_s1, 5632, %s16_s10, [#allocation3], %s560_s19, %s560_s19, %s561_s20  }
  0x11   :  { %557 = dma.done.wait [#allocation3], 5632  }
  0x12   :  { %558 = vsyncadd [#allocation3], 4294961664  ;;  %v466_v0 = vld [vmem:[#allocation2 + $0x4] ss:$16 sps:$4 sm:$0xff]   ;;  %v468_v1 = vld [vmem:[#allocation2 + $0xc] ss:$16 sps:$4 sm:$0xff]  }
  0x13   :  { %314 = vmatprep.subr.bf16.mxu0 %v466_v0  ;;  %v470_v2 = vld [vmem:[#allocation2] ss:$16 sps:$4 sm:$0xff]   ;;  %v471_v3 = vld [vmem:[#allocation2 + $0x8] ss:$16 sps:$4 sm:$0xff]   ;;  %357 = vmatprep.subr.bf16.mxu1 %v468_v1  ;;  %v472_v4 = vld [vmem:[#allocation2 + $0x24] ss:$16 sps:$4 sm:$0xff]  }
  0x14   :  { %315 = vmatpush1.bf16.msra.mxu0 %v470_v2  ;;  %358 = vmatpush1.bf16.msra.mxu1 %v471_v3  ;;  %v474_v5 = vld [vmem:[#allocation2 + $0x2c] ss:$16 sps:$4 sm:$0xff]   ;;  %v476_v6 = vld [vmem:[#allocation2 + $0x20] ss:$16 sps:$4 sm:$0xff]   ;;  %v477_v7 = vld [vmem:[#allocation2 + $0x28] ss:$16 sps:$4 sm:$0xff]  }
  0x15   :  { %316 = vmatprep.subr.bf16.mxu0 %v472_v4  ;;  %359 = vmatprep.subr.bf16.mxu1 %v474_v5  ;;  %v478_v8 = vld [vmem:[#allocation2 + $0x44] ss:$16 sps:$4 sm:$0xff]   ;;  %v480_v9 = vld [vmem:[#allocation2 + $0x4c] ss:$16 sps:$4 sm:$0xff]   ;;  %v482_v10 = vld [vmem:[#allocation2 + $0x40] ss:$16 sps:$4 sm:$0xff]  }
  0x16   :  { %v483_v11 = vld [vmem:[#allocation2 + $0x48] ss:$16 sps:$4 sm:$0xff]   ;;  %v484_v12 = vld [vmem:[#allocation2 + $0x64] ss:$16 sps:$4 sm:$0xff]   ;;  %v486_v13 = vld [vmem:[#allocation2 + $0x6c] ss:$16 sps:$4 sm:$0xff]  }
  0x17   :  { %v488_v14 = vld [vmem:[#allocation2 + $0x60] ss:$16 sps:$4 sm:$0xff]   ;;  %v489_v15 = vld [vmem:[#allocation2 + $0x68] ss:$16 sps:$4 sm:$0xff]   ;;  %v490_v16 = vld [vmem:[#allocation2 + $0x84] ss:$16 sps:$4 sm:$0xff]  }
  0x18   :  { %317 = vmatpush1.bf16.msra.mxu0 %v476_v6  ;;  %360 = vmatpush1.bf16.msra.mxu1 %v477_v7  ;;  %v492_v17 = vld [vmem:[#allocation2 + $0x8c] ss:$16 sps:$4 sm:$0xff]   ;;  %v494_v18 = vld [vmem:[#allocation2 + $0x80] ss:$16 sps:$4 sm:$0xff]   ;;  %v495_v19 = vld [vmem:[#allocation2 + $0x88] ss:$16 sps:$4 sm:$0xff]  }
  0x19   :  { %318 = vmatprep.subr.bf16.mxu0 %v478_v8  ;;  %361 = vmatprep.subr.bf16.mxu1 %v480_v9  ;;  %v496_v20 = vld [vmem:[#allocation2 + $0xa4] ss:$16 sps:$4 sm:$0xff]   ;;  %v498_v21 = vld [vmem:[#allocation2 + $0xac] ss:$16 sps:$4 sm:$0xff]   ;;  %v500_v22 = vld [vmem:[#allocation2 + $0xa0] ss:$16 sps:$4 sm:$0xff]  }
  0x1a   :  { %v501_v23 = vld [vmem:[#allocation2 + $0xa8] ss:$16 sps:$4 sm:$0xff]   ;;  %v502_v24 = vld [vmem:[#allocation2 + $0xc4] ss:$16 sps:$4 sm:$0xff]   ;;  %v504_v25 = vld [vmem:[#allocation2 + $0xcc] ss:$16 sps:$4 sm:$0xff]  }
  0x1b   :  { %v506_v26 = vld [vmem:[#allocation2 + $0xc0] ss:$16 sps:$4 sm:$0xff]   ;;  %v507_v27 = vld [vmem:[#allocation2 + $0xc8] ss:$16 sps:$4 sm:$0xff]   ;;  %v508_v28 = vld [vmem:[#allocation2 + $0xe4] ss:$16 sps:$4 sm:$0xff]  }
  0x1c   :  { %319 = vmatpush1.bf16.msra.mxu0 %v482_v10  ;;  %362 = vmatpush1.bf16.msra.mxu1 %v483_v11  ;;  %v510_v29 = vld [vmem:[#allocation2 + $0xec] ss:$16 sps:$4 sm:$0xff]   ;;  %v512_v30 = vld [vmem:[#allocation2 + $0xe0] ss:$16 sps:$4 sm:$0xff]   ;;  %v513_v31 = vld [vmem:[#allocation2 + $0xe8] ss:$16 sps:$4 sm:$0xff]  }
  0x1d   :  { %320 = vmatprep.subr.bf16.mxu0 %v484_v12  ;;  %363 = vmatprep.subr.bf16.mxu1 %v486_v13  ;;  %v514_v32 = vld [vmem:[#allocation2 + $0x104] ss:$16 sps:$4 sm:$0xff]   ;;  %v516_v33 = vld [vmem:[#allocation2 + $0x10c] ss:$16 sps:$4 sm:$0xff]   ;;  %vm297_vm0 = vcmask 375808   ;;  %vm301_vm1 = vcmask 1046528  }
  0x1e   :  { %v534_v34 = vld [vmem:[%s619_s0 + $0x4] ss:$8 sps:$4 sm:$0xff]   ;;  %v518_v35 = vld [vmem:[#allocation2 + $0x100] ss:$16 sps:$4 sm:$0xff]   ;;  %v519_v36 = vld [vmem:[#allocation2 + $0x108] ss:$16 sps:$4 sm:$0xff]  }
  0x1f   :  { %v520_v37 = vld [vmem:[#allocation2 + $0x124] ss:$16 sps:$4 sm:$0xff]   ;;  %v522_v38 = vld [vmem:[#allocation2 + $0x12c] ss:$16 sps:$4 sm:$0xff]   ;;  %460 = vmatprep.mubr.msk.bf16.mxu0 %vm297_vm0, %v534_v34  ;;  %462 = vmatprep.mubr.msk.bf16.mxu1 %vm297_vm0, %v534_v34  ;;  %v524_v39 = vld [vmem:[#allocation2 + $0x120] ss:$16 sps:$4 sm:$0xff]  }
  0x20   :  { %321 = vmatpush1.bf16.msra.mxu0 %v488_v14  ;;  %364 = vmatpush1.bf16.msra.mxu1 %v489_v15  ;;  %v525_v40 = vld [vmem:[#allocation2 + $0x128] ss:$16 sps:$4 sm:$0xff]   ;;  %v526_v41 = vld [vmem:[#allocation2 + $0x144] ss:$16 sps:$4 sm:$0x7f]  }
  0x21   :  { %322 = vmatprep.subr.bf16.mxu0 %v490_v16  ;;  %365 = vmatprep.subr.bf16.mxu1 %v492_v17  ;;  %v528_v42 = vld [vmem:[#allocation2 + $0x14c] ss:$16 sps:$4 sm:$0x7f]   ;;  %v530_v43 = vld [vmem:[#allocation2 + $0x140] ss:$16 sps:$4 sm:$0x7f]  }
  0x22   :  { %v531_v44 = vld [vmem:[#allocation2 + $0x148] ss:$16 sps:$4 sm:$0x7f]   ;;  %v303_v45 = vsel %vm301_vm1, %v530_v43, 0 }
  0x23   :  { %v309_v46 = vsel %vm301_vm1, %v531_v44, 0  ;;  %v532_v47 = vld [vmem:[%s619_s0] ss:$8 sps:$4 sm:$0xff]  }
  0x24   :  { %323 = vmatpush1.bf16.msra.mxu0 %v494_v18  ;;  %366 = vmatpush1.bf16.msra.mxu1 %v495_v19 }
  0x25   :  { %324 = vmatprep.subr.bf16.mxu0 %v496_v20  ;;  %367 = vmatprep.subr.bf16.mxu1 %v498_v21 }
  0x28   :  { %325 = vmatpush1.bf16.msra.mxu0 %v500_v22  ;;  %368 = vmatpush1.bf16.msra.mxu1 %v501_v23 }
  0x29   :  { %326 = vmatprep.subr.bf16.mxu0 %v502_v24  ;;  %369 = vmatprep.subr.bf16.mxu1 %v504_v25 }
  0x2c   :  { %327 = vmatpush1.bf16.msra.mxu0 %v506_v26  ;;  %370 = vmatpush1.bf16.msra.mxu1 %v507_v27 }
  0x2d   :  { %328 = vmatprep.subr.bf16.mxu0 %v508_v28  ;;  %371 = vmatprep.subr.bf16.mxu1 %v510_v29 }
  0x30   :  { %329 = vmatpush1.bf16.msra.mxu0 %v512_v30  ;;  %372 = vmatpush1.bf16.msra.mxu1 %v513_v31 }
  0x31   :  { %330 = vmatprep.subr.bf16.mxu0 %v514_v32  ;;  %373 = vmatprep.subr.bf16.mxu1 %v516_v33 }
  0x34   :  { %331 = vmatpush1.bf16.msra.mxu0 %v518_v35  ;;  %374 = vmatpush1.bf16.msra.mxu1 %v519_v36 }
  0x35   :  { %332 = vmatprep.subr.bf16.mxu0 %v520_v37  ;;  %375 = vmatprep.subr.bf16.mxu1 %v522_v38 }
  0x38   :  { %333 = vmatpush1.bf16.msra.mxu0 %v524_v39  ;;  %376 = vmatpush1.bf16.msra.mxu1 %v525_v40 }
  0x39   :  { %459 = vmatprep.subr.msk.bf16.mxu0 %vm301_vm1, %v526_v41  ;;  %461 = vmatprep.subr.msk.bf16.mxu1 %vm301_vm1, %v528_v42 }
  0x3c   :  { %335 = vmatpush1.bf16.msra.mxu0 %v303_v45  ;;  %378 = vmatpush1.bf16.msra.mxu1 %v309_v46 }
  0x3f   :  { %347 = vmatmul.mubr.bf16.vlgmr.msra.gmra.mrb[0].mxu0 %v532_v47  ;;  %390 = vmatmul.mubr.bf16.vlgmr.msra.gmra.mrb[0].mxu1 %v532_v47 }
 0x112   :  { %v348_v48 = vpop.f32.mrb[0].mxu0  ;;  %v391_v49 = vpop.f32.mrb[0].mxu1 }
 0x113   :  { %400 = vst [vmem:[%s621_s2] sm:$0xff] %v348_v48  ;;  %402 = vst [vmem:[%s621_s2 + $0x10] sm:$0xff] %v391_v49  ;;  %v350_v50 = vpop.f32.mrb[1].mxu0  ;;  %v393_v51 = vpop.f32.mrb[1].mxu1 }
 0x114   :  { %401 = vst [vmem:[%s621_s2 + $0x8] sm:$0xff] %v350_v50  ;;  %403 = vst [vmem:[%s621_s2 + $0x18] sm:$0xff] %v393_v51  ;;  %v352_v52 = vpop.f32.mrb[2].mxu0  ;;  %v395_v53 = vpop.f32.mrb[2].mxu1 }
 0x115   :  { %404 = vst [vmem:[%s621_s2 + $0x20] sm:$0xff] %v352_v52  ;;  %406 = vst [vmem:[%s621_s2 + $0x30] sm:$0xff] %v395_v53  ;;  %v354_v54 = vpop.f32.mrb[3].mxu0  ;;  %v397_v55 = vpop.f32.mrb[3].mxu1 }
 0x116   :  { %405 = vst [vmem:[%s621_s2 + $0x28] sm:$0xff] %v354_v54  ;;  %407 = vst [vmem:[%s621_s2 + $0x38] sm:$0xff] %v397_v55 }
 0x117   :  { %412 = vsyncpa [#allocation3], 1 }

// kernel: m2l_layer_forward.3
= control target key start
LH: loop header
LB: loop body
LE: loop exit
PB: predicated region body
PF: predicated region fallthrough
CT: control target
= control target key end

     0   :  { %vm132_vm0 = vcmask 785408   ;;  %s818_s1 = inlined_call_operand.vmem [shape: bf16[96,128], index: 1, kind: input, shape index: {}]   ;;  %s819_s0 = inlined_call_operand.vmem [shape: bf16[128,96], index: 0, kind: input, shape index: {}]   ;;  %s820_s3 = inlined_call_operand.vmem [shape: bf16[128,128], index: 3, kind: input, shape index: {}]   ;;  %s821_s2 = inlined_call_operand.vmem [shape: f32[1,128], index: 2, kind: input, shape index: {}]   ;;  %s822_s4 = inlined_call_operand.vmem [shape: f32[1,128], index: 4, kind: input, shape index: {}]   ;;  %s823_s5 = inlined_call_operand.vmem [shape: f32[128,128], index: 5, kind: output, shape index: {}]  }
   0x1   :  { %v620_v0 = vld [vmem:[%s818_s1] sm:$0xff]   ;;  %v621_v1 = vld [vmem:[%s818_s1 + $0x8] sm:$0xff]   ;;  %v622_v2 = vld [vmem:[%s818_s1 + $0x10] sm:$0xff]  }
   0x2   :  { %560 = vmatprep.subr.bf16.mxu0 %v620_v0  ;;  %v626_v3 = vld [vmem:[%s819_s0] sm:$0xff]   ;;  %v623_v4 = vld [vmem:[%s818_s1 + $0x18] sm:$0xff]   ;;  %v635_v7 = vld [vmem:[%s820_s3 + $0x8] sm:$0xff]  }
   0x3   :  { %561 = vmatpush3.bf16.msra.mxu0 %v620_v0  ;;  %572 = vmatprep.mubr.msk.bf16.mxu0 %vm132_vm0, %v626_v3  ;;  %v624_v5 = vld [vmem:[%s818_s1 + $0x20] sm:$0xff]   ;;  %v625_v8 = vld [vmem:[%s818_s1 + $0x28] sm:$0xff]   ;;  %v636_v9 = vld [vmem:[%s820_s3 + $0x10] sm:$0xff]  }
   0x4   :  { %562 = vmatprep.subr.bf16.mxu0 %v621_v1  ;;  %v634_v6 = vld [vmem:[%s820_s3] sm:$0xff]   ;;  %v627_v10 = vld [vmem:[%s819_s0 + $0x8] sm:$0xff]   ;;  %v637_v11 = vld [vmem:[%s820_s3 + $0x18] sm:$0xff]  }
   0x5   :  { %588 = vmatprep.subr.bf16.mxu1 %v634_v6  ;;  %v628_v12 = vld [vmem:[%s819_s0 + $0x10] sm:$0xff]   ;;  %v638_v13 = vld [vmem:[%s820_s3 + $0x20] sm:$0xff]   ;;  %v629_v14 = vld [vmem:[%s819_s0 + $0x18] sm:$0xff]  }
   0x6   :  { %589 = vmatpush3.bf16.msra.mxu1 %v634_v6  ;;  %v630_v15 = vld [vmem:[%s819_s0 + $0x20] sm:$0xff]   ;;  %v631_v16 = vld [vmem:[%s819_s0 + $0x28] sm:$0xff]   ;;  %v632_v17 = vld [vmem:[%s819_s0 + $0x30] sm:$0xff]  }
   0x7   :  { %563 = vmatpush3.bf16.msra.mxu0 %v621_v1  ;;  %590 = vmatprep.subr.bf16.mxu1 %v635_v7  ;;  %v633_v18 = vld [vmem:[%s819_s0 + $0x38] sm:$0xff]   ;;  %v639_v19 = vld [vmem:[%s820_s3 + $0x28] sm:$0xff]   ;;  %v640_v20 = vld [vmem:[%s820_s3 + $0x30] sm:$0xff]  }
   0x8   :  { %564 = vmatprep.subr.bf16.mxu0 %v622_v2  ;;  %v641_v21 = vld [vmem:[%s820_s3 + $0x38] sm:$0xff]   ;;  %v749_v22 = vld [vmem:[%s821_s2] ss:$0 sm:$0xff] }
   0xa   :  { %591 = vmatpush3.bf16.msra.mxu1 %v635_v7 }
   0xb   :  { %565 = vmatpush3.bf16.msra.mxu0 %v622_v2  ;;  %592 = vmatprep.subr.bf16.mxu1 %v636_v9 }
   0xc   :  { %566 = vmatprep.subr.bf16.mxu0 %v623_v4 }
   0xe   :  { %593 = vmatpush3.bf16.msra.mxu1 %v636_v9 }
   0xf   :  { %567 = vmatpush3.bf16.msra.mxu0 %v623_v4  ;;  %594 = vmatprep.subr.bf16.mxu1 %v637_v11 }
  0x10   :  { %568 = vmatprep.subr.bf16.mxu0 %v624_v5 }
  0x12   :  { %595 = vmatpush3.bf16.msra.mxu1 %v637_v11 }
  0x13   :  { %569 = vmatpush3.bf16.msra.mxu0 %v624_v5  ;;  %596 = vmatprep.subr.bf16.mxu1 %v638_v13 }
  0x14   :  { %570 = vmatprep.subr.bf16.mxu0 %v625_v8 }
  0x16   :  { %597 = vmatpush3.bf16.msra.mxu1 %v638_v13 }
  0x17   :  { %571 = vmatpush3.bf16.msra.mxu0 %v625_v8  ;;  %598 = vmatprep.subr.bf16.mxu1 %v639_v19 }
  0x1a   :  { %573 = vmatmul.mubr.msk.bf16.vlgmr.msra.gmra.mrb[0].mxu0 %vm132_vm0, %v627_v10  ;;  %599 = vmatpush3.bf16.msra.mxu1 %v639_v19 }
  0x1b   :  { %576 = vmatprep.mubr.msk.bf16.mxu0 %vm132_vm0, %v628_v12  ;;  %600 = vmatprep.subr.bf16.mxu1 %v640_v20 }
  0x1e   :  { %601 = vmatpush3.bf16.msra.mxu1 %v640_v20 }
  0x1f   :  { %602 = vmatprep.subr.bf16.mxu1 %v641_v21 }
  0x22   :  { %577 = vmatmul.mubr.msk.bf16.gmra.mrb[4].mxu0 %vm132_vm0, %v629_v14  ;;  %603 = vmatpush3.bf16.msra.mxu1 %v641_v21 }
  0x23   :  { %580 = vmatprep.mubr.msk.bf16.mxu0 %vm132_vm0, %v630_v15 }
  0x2a   :  { %581 = vmatmul.mubr.msk.bf16.gmra.mrb[8].mxu0 %vm132_vm0, %v631_v16 }
  0x2b   :  { %584 = vmatprep.mubr.msk.bf16.mxu0 %vm132_vm0, %v632_v17 }
  0x32   :  { %585 = vmatmul.mubr.msk.bf16.gmra.mrb[12].mxu0 %vm132_vm0, %v633_v18 }
  0xed   :  { %v574_v23 = vpop.f32.mrb[0].mxu0 }
  0xee   :  { %v200_v24 = vadd.f32 %v574_v23, %v749_v22  ;;  %v191_v25 = vpop.f32.mrb[1].mxu0 }
  0xef   :  { %v192_v26 = vadd.f32 %v749_v22, %v191_v25  ;;  %v575_v27 = vpop.f32.mrb[2].mxu0 }
  0xf0   :  { %v272_v28 = vmul.f32 0.01, %v200_v24  ;;  %v203_v29 = vadd.f32 %v575_v27, %v749_v22  ;;  %v194_v30 = vpop.f32.mrb[3].mxu0  ;;  %vm256_vm1 = vcmp.gt.f32.partialorder %v200_v24, 0.0 }
  0xf1   :  { %v270_v31 = vmul.f32 0.01, %v192_v26  ;;  %v195_v32 = vadd.f32 %v749_v22, %v194_v30  ;;  %vm254_vm3 = vcmp.gt.f32.partialorder %v192_v26, 0.0 }
  0xf2   :  { %vm257_vm2 = vcmp.gt.f32.partialorder %v203_v29, 0.0  ;;  %v273_v33 = vmul.f32 0.01, %v203_v29  ;;  %v288_v35 = vsel %vm256_vm1, %v200_v24, %v272_v28 }
  0xf3   :  { %v271_v34 = vmul.f32 0.01, %v195_v32  ;;  %vm255_vm4 = vcmp.gt.f32.partialorder %v195_v32, 0.0  ;;  %v286_v38 = vsel %vm254_vm3, %v192_v26, %v270_v31 }
  0xf4   :  { %v289_v36 = vsel %vm257_vm2, %v203_v29, %v273_v33 }
  0xf5   :  { %v578_v37 = vpop.f32.mrb[4].mxu0  ;;  %v287_v39 = vsel %vm255_vm4, %v195_v32, %v271_v34  ;;  %v303_v40 = vpack.c.bf16 %v289_v36, %v288_v35  ;;  %v521_v32 = vld [vmem:[%s822_s4] ss:$0 sm:$0xff] }
  0xf6   :  { %v216_v41 = vadd.f32 %v578_v37, %v749_v22  ;;  %v207_v42 = vpop.f32.mrb[5].mxu0  ;;  %v302_v43 = vpack.c.bf16 %v287_v39, %v286_v38 }
  0xf7   :  { %v208_v44 = vadd.f32 %v749_v22, %v207_v42  ;;  %v579_v45 = vpop.f32.mrb[6].mxu0 }
  0xf8   :  { %v276_v46 = vmul.f32 0.01, %v216_v41  ;;  %v219_v47 = vadd.f32 %v579_v45, %v749_v22  ;;  %v210_v48 = vpop.f32.mrb[7].mxu0  ;;  %604 = vmatprep.mubr.bf16.mxu1 %v302_v43  ;;  %vm260_vm5 = vcmp.gt.f32.partialorder %v216_v41, 0.0 }
  0xf9   :  { %v274_v49 = vmul.f32 0.01, %v208_v44  ;;  %v211_v50 = vadd.f32 %v749_v22, %v210_v48  ;;  %605 = vmatmul.mubr.bf16.vlgmr.msra.gmra.mrb[0].mxu1 %v303_v40  ;;  %vm258_vm6 = vcmp.gt.f32.partialorder %v208_v44, 0.0 }
  0xfa   :  { %vm261_vm7 = vcmp.gt.f32.partialorder %v219_v47, 0.0  ;;  %v277_v51 = vmul.f32 0.01, %v219_v47  ;;  %v292_v53 = vsel %vm260_vm5, %v216_v41, %v276_v46 }
  0xfb   :  { %vm259_vm8 = vcmp.gt.f32.partialorder %v211_v50, 0.0  ;;  %v275_v52 = vmul.f32 0.01, %v211_v50  ;;  %v290_v56 = vsel %vm258_vm6, %v208_v44, %v274_v49 }
  0xfc   :  { %v293_v54 = vsel %vm261_vm7, %v219_v47, %v277_v51 }
  0xfd   :  { %v582_v55 = vpop.f32.mrb[8].mxu0  ;;  %v291_v57 = vsel %vm259_vm8, %v211_v50, %v275_v52  ;;  %v305_v58 = vpack.c.bf16 %v293_v54, %v292_v53 }
  0xfe   :  { %v232_v59 = vadd.f32 %v582_v55, %v749_v22  ;;  %v223_v60 = vpop.f32.mrb[9].mxu0  ;;  %v304_v61 = vpack.c.bf16 %v291_v57, %v290_v56 }
  0xff   :  { %v224_v62 = vadd.f32 %v749_v22, %v223_v60  ;;  %v583_v63 = vpop.f32.mrb[10].mxu0 }
 0x100   :  { %v280_v0 = vmul.f32 0.01, %v232_v59  ;;  %v235_v1 = vadd.f32 %v583_v63, %v749_v22  ;;  %v226_v2 = vpop.f32.mrb[11].mxu0  ;;  %608 = vmatprep.mubr.bf16.mxu1 %v304_v61  ;;  %vm264_vm9 = vcmp.gt.f32.partialorder %v232_v59, 0.0 }
 0x101   :  { %v278_v3 = vmul.f32 0.01, %v224_v62  ;;  %v227_v4 = vadd.f32 %v749_v22, %v226_v2  ;;  %609 = vmatmul.mubr.bf16.gmra.mrb[4].mxu1 %v305_v58  ;;  %vm262_vm10 = vcmp.gt.f32.partialorder %v224_v62, 0.0 }
 0x102   :  { %vm265_vm11 = vcmp.gt.f32.partialorder %v235_v1, 0.0  ;;  %v281_v5 = vmul.f32 0.01, %v235_v1  ;;  %v296_v7 = vsel %vm264_vm9, %v232_v59, %v280_v0 }
 0x103   :  { %vm263_vm12 = vcmp.gt.f32.partialorder %v227_v4, 0.0  ;;  %v279_v6 = vmul.f32 0.01, %v227_v4  ;;  %v294_v10 = vsel %vm262_vm10, %v224_v62, %v278_v3 }
 0x104   :  { %v297_v8 = vsel %vm265_vm11, %v235_v1, %v281_v5 }
 0x105   :  { %v586_v9 = vpop.f32.mrb[12].mxu0  ;;  %v295_v11 = vsel %vm263_vm12, %v227_v4, %v279_v6  ;;  %v307_v12 = vpack.c.bf16 %v297_v8, %v296_v7 }
 0x106   :  { %v248_v13 = vadd.f32 %v586_v9, %v749_v22  ;;  %v239_v14 = vpop.f32.mrb[13].mxu0  ;;  %v306_v15 = vpack.c.bf16 %v295_v11, %v294_v10 }
 0x107   :  { %v240_v16 = vadd.f32 %v749_v22, %v239_v14  ;;  %v587_v17 = vpop.f32.mrb[14].mxu0 }
 0x108   :  { %v284_v18 = vmul.f32 0.01, %v248_v13  ;;  %v251_v19 = vadd.f32 %v587_v17, %v749_v22  ;;  %v242_v20 = vpop.f32.mrb[15].mxu0  ;;  %612 = vmatprep.mubr.bf16.mxu1 %v306_v15  ;;  %vm268_vm13 = vcmp.gt.f32.partialorder %v248_v13, 0.0 }
 0x109   :  { %v282_v21 = vmul.f32 0.01, %v240_v16  ;;  %v243_v23 = vadd.f32 %v749_v22, %v242_v20  ;;  %613 = vmatmul.mubr.bf16.gmra.mrb[8].mxu1 %v307_v12  ;;  %vm266_vm14 = vcmp.gt.f32.partialorder %v240_v16, 0.0 }
 0x10a   :  { %vm269_vm15 = vcmp.gt.f32.partialorder %v251_v19, 0.0  ;;  %v285_v24 = vmul.f32 0.01, %v251_v19  ;;  %v300_v26 = vsel %vm268_vm13, %v248_v13, %v284_v18 }
 0x10b   :  { %vm267_vm0 = vcmp.gt.f32.partialorder %v243_v23, 0.0  ;;  %v283_v25 = vmul.f32 0.01, %v243_v23  ;;  %v298_v28 = vsel %vm266_vm14, %v240_v16, %v282_v21 }
 0x10c   :  { %v301_v27 = vsel %vm269_vm15, %v251_v19, %v285_v24 }
 0x10d   :  { %v299_v29 = vsel %vm267_vm0, %v243_v23, %v283_v25  ;;  %v309_v30 = vpack.c.bf16 %v301_v27, %v300_v26 }
 0x10e   :  { %v308_v31 = vpack.c.bf16 %v299_v29, %v298_v28 }
 0x110   :  { %616 = vmatprep.mubr.bf16.mxu1 %v308_v31 }
 0x111   :  { %617 = vmatmul.mubr.bf16.gmra.mrb[12].mxu1 %v309_v30 }
 0x1cc   :  { %v606_v33 = vpop.f32.mrb[0].mxu1 }
 0x1cd   :  { %v424_v22 = vadd.f32 %v606_v33, %v521_v32  ;;  %v415_v34 = vpop.f32.mrb[1].mxu1 }
 0x1ce   :  { %v416_v35 = vadd.f32 %v521_v32, %v415_v34  ;;  %v607_v36 = vpop.f32.mrb[2].mxu1 }
 0x1cf   :  { %480 = vst [vmem:[%s823_s5 + $0x10] sm:$0xff] %v424_v22  ;;  %v427_v37 = vadd.f32 %v607_v36, %v521_v32  ;;  %v418_v38 = vpop.f32.mrb[3].mxu1 }
 0x1d0   :  { %478 = vst [vmem:[%s823_s5] sm:$0xff] %v416_v35  ;;  %v419_v39 = vadd.f32 %v521_v32, %v418_v38 }
 0x1d1   :  { %481 = vst [vmem:[%s823_s5 + $0x18] sm:$0xff] %v427_v37 }
 0x1d2   :  { %479 = vst [vmem:[%s823_s5 + $0x8] sm:$0xff] %v419_v39 }
 0x1d4   :  { %v610_v40 = vpop.f32.mrb[4].mxu1 }
 0x1d5   :  { %v440_v41 = vadd.f32 %v610_v40, %v521_v32  ;;  %v431_v42 = vpop.f32.mrb[5].mxu1 }
 0x1d6   :  { %v432_v43 = vadd.f32 %v521_v32, %v431_v42  ;;  %v611_v44 = vpop.f32.mrb[6].mxu1 }
 0x1d7   :  { %484 = vst [vmem:[%s823_s5 + $0x30] sm:$0xff] %v440_v41  ;;  %v443_v45 = vadd.f32 %v611_v44, %v521_v32  ;;  %v434_v46 = vpop.f32.mrb[7].mxu1 }
 0x1d8   :  { %482 = vst [vmem:[%s823_s5 + $0x20] sm:$0xff] %v432_v43  ;;  %v435_v47 = vadd.f32 %v521_v32, %v434_v46 }
 0x1d9   :  { %485 = vst [vmem:[%s823_s5 + $0x38] sm:$0xff] %v443_v45 }
 0x1da   :  { %483 = vst [vmem:[%s823_s5 + $0x28] sm:$0xff] %v435_v47 }
 0x1dc   :  { %v614_v48 = vpop.f32.mrb[8].mxu1 }
 0x1dd   :  { %v456_v49 = vadd.f32 %v614_v48, %v521_v32  ;;  %v447_v50 = vpop.f32.mrb[9].mxu1 }
 0x1de   :  { %v448_v51 = vadd.f32 %v521_v32, %v447_v50  ;;  %v615_v52 = vpop.f32.mrb[10].mxu1 }
 0x1df   :  { %488 = vst [vmem:[%s823_s5 + $0x50] sm:$0xff] %v456_v49  ;;  %v459_v53 = vadd.f32 %v615_v52, %v521_v32  ;;  %v450_v54 = vpop.f32.mrb[11].mxu1 }
 0x1e0   :  { %486 = vst [vmem:[%s823_s5 + $0x40] sm:$0xff] %v448_v51  ;;  %v451_v55 = vadd.f32 %v521_v32, %v450_v54 }
 0x1e1   :  { %489 = vst [vmem:[%s823_s5 + $0x58] sm:$0xff] %v459_v53 }
 0x1e2   :  { %487 = vst [vmem:[%s823_s5 + $0x48] sm:$0xff] %v451_v55 }
 0x1e4   :  { %v618_v56 = vpop.f32.mrb[12].mxu1 }
 0x1e5   :  { %v472_v57 = vadd.f32 %v618_v56, %v521_v32  ;;  %v463_v58 = vpop.f32.mrb[13].mxu1 }
 0x1e6   :  { %v464_v59 = vadd.f32 %v521_v32, %v463_v58  ;;  %v619_v60 = vpop.f32.mrb[14].mxu1 }
 0x1e7   :  { %492 = vst [vmem:[%s823_s5 + $0x70] sm:$0xff] %v472_v57  ;;  %v475_v61 = vadd.f32 %v619_v60, %v521_v32  ;;  %v466_v62 = vpop.f32.mrb[15].mxu1 }
 0x1e8   :  { %490 = vst [vmem:[%s823_s5 + $0x60] sm:$0xff] %v464_v59  ;;  %v467_v63 = vadd.f32 %v521_v32, %v466_v62 }
 0x1e9   :  { %493 = vst [vmem:[%s823_s5 + $0x78] sm:$0xff] %v475_v61 }
 0x1ea   :  { %491 = vst [vmem:[%s823_s5 + $0x68] sm:$0xff] %v467_v63 }

</bundles_post_ra>
